<compile_context>
chip_gen: v7x
topology: tpu7x:2x2x1
jax: 0.10.0
libtpu: 0.0.40
codegen_flags: <defaults>
</compile_context>

<pallas_src>
import functools
import math

import jax
import jax.numpy as jnp
from jax import lax
from jax.experimental import pallas as pl
from jax.experimental.pallas import tpu as pltpu

EPS = 1e-6
ALPHA = 4          # implemented explicitly as (p*p)*(p*p)
BIG = 1e30


def _round_up(x, m):
    return ((x + m - 1) // m) * m


def _cdiv(a, b):
    return (a + b - 1) // b


def _whd_kernel(prob_ref, gty_ref, gtx_ref, scal_ref,
                w_ref, p_ref, cmin_ref,
                *, tile_h, chunk_h, width, n_gt, n_gt_lanes, eps_over_max_dist):
    b = pl.program_id(0)      # batch
    c = pl.program_id(1)      # row chunk (parallel)
    t = pl.program_id(2)      # row tile within chunk (reduction axis)

    @pl.when(t == 0)
    def _init():
        w_ref[...] = jnp.zeros_like(w_ref)
        p_ref[...] = jnp.zeros_like(p_ref)
        cmin_ref[...] = jnp.full_like(cmin_ref, BIG)

    ny = scal_ref[b, 0]                    # per-image normalization (orig_h / H)
    nx = scal_ref[b, 1]                    # per-image normalization (orig_w / W)

    p = prob_ref[0, 0]                     # (TH, W) probabilities of this tile

    # normalized pixel coordinates of this tile, generated in-kernel
    row0 = (c * chunk_h + t * tile_h).astype(jnp.float32)
    rows = lax.broadcasted_iota(jnp.int32, (tile_h, 1), 0).astype(jnp.float32) + row0
    cols = lax.broadcasted_iota(jnp.int32, (1, width), 1).astype(jnp.float32)
    ry = ny * rows                         # (TH, 1)
    cx = nx * cols                         # (1, W)

    # per-pixel term-2 weights, computed once per tile (not per GT point)
    p2 = p * p
    inv = 1.0 / (p2 * p2 + eps_over_max_dist)      # 1 / (p^4 + eps/max_dist)
    eps_inv = EPS * inv

    lane_ids = lax.broadcasted_iota(jnp.int32, (1, n_gt_lanes), 1)

    def body(j, carry):
        mind, colv = carry
        gy = gty_ref[b, j]                 # scalar reads from SMEM
        gx = gtx_ref[b, j]
        dy = ry - gy                       # (TH, 1)
        dx = cx - gx                       # (1, W)
        d = jnp.sqrt(dy * dy + dx * dx)    # (TH, W) via broadcast
        # term 1: running per-pixel min over GT points
        mind = jnp.minimum(mind, d)
        # term 2: min over the pixels of this tile of (d + eps) / (p^4 + eps/maxd)
        val = d * inv + eps_inv
        m = jnp.min(val, axis=0, keepdims=True)    # (1, W)
        m = jnp.min(m, axis=1, keepdims=True)      # (1, 1)
        colv = jnp.where(lane_ids == j, jnp.minimum(colv, m), colv)
        return mind, colv

    mind0 = jnp.full((tile_h, width), BIG, jnp.float32)
    mind, colv = lax.fori_loop(0, n_gt, body, (mind0, cmin_ref[0, 0]))
    cmin_ref[0, 0] = colv

    # term-1 partials: reduce over the tile's rows now, keep W lanes per chunk
    w_ref[0, 0] += jnp.sum(p * mind, axis=0, keepdims=True)
    p_ref[0, 0] += jnp.sum(p, axis=0, keepdims=True)


def weighted_hausdorff_distance(prob_map, gt, orig_sizes, return_2_terms=False):
    """prob_map (B,H,W) in [0,1]; gt (B,M,2) of (y,x) GT points; orig_sizes (B,2)=(h,w)."""
    prob_map = prob_map.astype(jnp.float32)
    gt = gt.astype(jnp.float32)
    orig_sizes = orig_sizes.astype(jnp.float32)

    B, H, W = prob_map.shape
    M = gt.shape[1]
    assert M >= 1
    max_dist = math.sqrt(H * H + W * W)

    # --- tiling: full image width on lanes, rows tiled on sublanes ------------
    C = 2                                   # row chunks -> extra "parallel" grid units
    TILE_ELEMS = 128 * 1024                 # ~0.5 MiB f32 pixel tile per grid step
    TH = max(8, min(_round_up(_cdiv(H, C), 8), (TILE_ELEMS // W) // 8 * 8))
    T = _cdiv(_cdiv(H, C), TH)              # row tiles per chunk
    Hc = T * TH                             # rows per chunk (padded)
    H_pad = C * Hc

    # per-batch normalization factors (orig / resized)
    ny = orig_sizes[:, 0] / H
    nx = orig_sizes[:, 1] / W
    scal = jnp.stack([ny, nx], axis=1)                    # (B, 2)  -> SMEM
    gty = gt[:, :, 0] * ny[:, None]                       # (B, M)  normalized GT rows -> SMEM
    gtx = gt[:, :, 1] * nx[:, None]                       # (B, M)  normalized GT cols -> SMEM

    # zero-padded probabilities (p = 0 rows are numerically inert for both terms)
    prob_p = jnp.pad(prob_map, ((0, 0), (0, H_pad - H), (0, 0)))
    prob_p = prob_p.reshape(B, C, Hc, W)

    ML = _round_up(M, 128)                                # lanes for per-GT-point minima

    kernel = functools.partial(
        _whd_kernel, tile_h=TH, chunk_h=Hc, width=W, n_gt=M, n_gt_lanes=ML,
        eps_over_max_dist=EPS / max_dist)

    w_out, p_out, cmin_out = pl.pallas_call(
        kernel,
        out_shape=(jax.ShapeDtypeStruct((B, C, 1, W), jnp.float32),
                   jax.ShapeDtypeStruct((B, C, 1, W), jnp.float32),
                   jax.ShapeDtypeStruct((B, C, 1, ML), jnp.float32)),
        grid_spec=pltpu.PrefetchScalarGridSpec(
            num_scalar_prefetch=0,
            grid=(B, C, T),
            in_specs=[
                pl.BlockSpec((1, 1, TH, W), lambda b, c, t: (b, c, t, 0)),   # prob tile
                pl.BlockSpec(memory_space=pltpu.MemorySpace.SMEM),           # gty (B,M)
                pl.BlockSpec(memory_space=pltpu.MemorySpace.SMEM),           # gtx (B,M)
                pl.BlockSpec(memory_space=pltpu.MemorySpace.SMEM),           # [ny, nx] (B,2)
            ],
            out_specs=[
                pl.BlockSpec((1, 1, 1, W), lambda b, c, t: (b, c, 0, 0)),    # sum p*min_d
                pl.BlockSpec((1, 1, 1, W), lambda b, c, t: (b, c, 0, 0)),    # sum p
                pl.BlockSpec((1, 1, 1, ML), lambda b, c, t: (b, c, 0, 0)),   # per-GT min
            ]),
        compiler_params=pltpu.CompilerParams(
            dimension_semantics=("parallel", "parallel", "arbitrary"),
            vmem_limit_bytes=32 * 1024 * 1024),
    )(prob_p, gty, gtx, scal)

    # Cheap final reductions in plain XLA (a few KiB of data).
    wsum = w_out.sum(axis=(1, 2, 3))                      # (B,)
    psum = p_out.sum(axis=(1, 2, 3))
    terms_1 = wsum / (psum + EPS)

    cmin = cmin_out.min(axis=1)[:, 0, :]                  # (B, ML) min over row chunks
    cmin = jnp.clip(cmin, 0.0, max_dist)
    mask = (jnp.arange(ML) < M)[None, :]
    terms_2 = jnp.where(mask, cmin, 0.0).sum(axis=1) / M

    if return_2_terms:
        return terms_1.mean(), terms_2.mean()
    return terms_1.mean() + terms_2.mean()


def whd_reference(prob_map, gt, orig_sizes):
    """Pure-JAX transcription of the PyTorch forward (for verification)."""
    B, H, W = prob_map.shape
    max_dist = math.sqrt(H * H + W * W)
    ys, xs = jnp.meshgrid(jnp.arange(H), jnp.arange(W), indexing="ij")
    locs = jnp.stack([ys.ravel(), xs.ravel()], -1).astype(jnp.float32)       # (N, 2)
    t1s, t2s = [], []
    for b in range(B):
        nf = orig_sizes[b] / jnp.array([H, W], jnp.float32)
        nrm_x = nf[None, :] * locs
        nrm_y = nf[None, :] * gt[b]
        d = jnp.sqrt(jnp.sum((nrm_x[:, None, :] - nrm_y[None, :, :]) ** 2, -1))
        p = prob_map[b].ravel()
        t1 = jnp.sum(p * d.min(axis=1)) / (p.sum() + EPS)
        ddp = jnp.min((d + EPS) / (p[:, None] ** ALPHA + EPS / max_dist), axis=0)
        t2 = jnp.mean(jnp.clip(ddp, 0.0, max_dist))
        t1s.append(t1)
        t2s.append(t2)
    return jnp.mean(jnp.stack(t1s)) + jnp.mean(jnp.stack(t2s))


if __name__ == "__main__":
    B, H, W, M = 2, 16, 16, 8
    key = jax.random.PRNGKey(0)
    k1, k2 = jax.random.split(key, 2)
    prob_map = jax.random.uniform(k1, (B, H, W), jnp.float32)                 # values in [0, 1]
    gt = jax.random.uniform(k2, (B, M, 2), jnp.float32, 0.0, float(H - 1))    # (y, x) points
    orig_sizes = jnp.array([[32.0, 24.0], [20.0, 28.0]], jnp.float32)

    out = weighted_hausdorff_distance(prob_map, gt, orig_sizes)
    out = jax.block_until_ready(out)

    ref = whd_reference(prob_map, gt, orig_sizes)
    assert jnp.allclose(out, ref, rtol=1e-3, atol=1e-3), (out, ref)
    print("KERNEL_OK")
</pallas_src>

<mosaic_0001>
module attributes {stable_mosaic.version = 11 : i64} {
  func.func @_whd_kernel(%arg0: i32, %arg1: i32, %arg2: i32, %arg3: memref<1x1x8x16xf32, #tpu.memory_space<vmem>>, %arg4: memref<2x8xf32, #tpu.memory_space<smem>>, %arg5: memref<2x8xf32, #tpu.memory_space<smem>>, %arg6: memref<2x2xf32, #tpu.memory_space<smem>>, %arg7: memref<1x1x1x16xf32, #tpu.memory_space<vmem>>, %arg8: memref<1x1x1x16xf32, #tpu.memory_space<vmem>>, %arg9: memref<1x1x1x128xf32, #tpu.memory_space<vmem>>) attributes {dimension_semantics = [#tpu.dimension_semantics<parallel>, #tpu.dimension_semantics<parallel>, #tpu.dimension_semantics<arbitrary>], iteration_bounds = array<i64: 2, 2, 1>, scalar_prefetch = 0 : i64, scratch_operands = 0 : i64, tpu.core_type = #tpu.core_type<tc>, window_params = [{transform_indices = @transform_0, window_bounds = array<i64: 1, 1, 8, 16>}, {transform_indices = @transform_1, window_bounds = array<i64: 2, 8>}, {transform_indices = @transform_2, window_bounds = array<i64: 2, 8>}, {transform_indices = @transform_3, window_bounds = array<i64: 2, 2>}, {transform_indices = @transform_4, window_bounds = array<i64: 1, 1, 1, 16>}, {transform_indices = @transform_5, window_bounds = array<i64: 1, 1, 1, 16>}, {transform_indices = @transform_6, window_bounds = array<i64: 1, 1, 1, 128>}]} {
    %c0_i32 = arith.constant 0 : i32
    %0 = arith.cmpi eq, %arg2, %c0_i32 : i32
    %1 = arith.extui %0 : i1 to i32
    %c0_i32_0 = arith.constant 0 : i32
    %2 = arith.cmpi ne, %1, %c0_i32_0 : i32
    scf.if %2 {
      %cst_38 = arith.constant 0.000000e+00 : f32
      %57 = vector.broadcast %cst_38 : f32 to vector<1x1x1x16xf32>
      %c0_39 = arith.constant 0 : index
      %c0_40 = arith.constant 0 : index
      %c0_41 = arith.constant 0 : index
      %c0_42 = arith.constant 0 : index
      %58 = vector.load %arg7[%c0_39, %c0_40, %c0_41, %c0_42] : memref<1x1x1x16xf32, #tpu.memory_space<vmem>>, vector<1x1x1x16xf32>
      tpu.vector_store %arg7[%c0_39, %c0_40, %c0_41, %c0_42], %57 {strides = array<i32>} : memref<1x1x1x16xf32, #tpu.memory_space<vmem>>, vector<1x1x1x16xf32>,
      %cst_43 = arith.constant 0.000000e+00 : f32
      %59 = vector.broadcast %cst_43 : f32 to vector<1x1x1x16xf32>
      %c0_44 = arith.constant 0 : index
      %c0_45 = arith.constant 0 : index
      %c0_46 = arith.constant 0 : index
      %c0_47 = arith.constant 0 : index
      %60 = vector.load %arg8[%c0_44, %c0_45, %c0_46, %c0_47] : memref<1x1x1x16xf32, #tpu.memory_space<vmem>>, vector<1x1x1x16xf32>
      tpu.vector_store %arg8[%c0_44, %c0_45, %c0_46, %c0_47], %59 {strides = array<i32>} : memref<1x1x1x16xf32, #tpu.memory_space<vmem>>, vector<1x1x1x16xf32>,
      %cst_48 = arith.constant 1.000000e+30 : f32
      %61 = vector.broadcast %cst_48 : f32 to vector<1x1x1x128xf32>
      %c0_49 = arith.constant 0 : index
      %c0_50 = arith.constant 0 : index
      %c0_51 = arith.constant 0 : index
      %c0_52 = arith.constant 0 : index
      %62 = vector.load %arg9[%c0_49, %c0_50, %c0_51, %c0_52] : memref<1x1x1x128xf32, #tpu.memory_space<vmem>>, vector<1x1x1x128xf32>
      tpu.vector_store %arg9[%c0_49, %c0_50, %c0_51, %c0_52], %61 {strides = array<i32>} : memref<1x1x1x128xf32, #tpu.memory_space<vmem>>, vector<1x1x1x128xf32>,
    } else {
    }
    %3 = arith.index_cast %arg0 : i32 to index
    %c0 = arith.constant 0 : index
    %4 = memref.load %arg6[%3, %c0] : memref<2x2xf32, #tpu.memory_space<smem>>
    %5 = arith.index_cast %arg0 : i32 to index
    %c1 = arith.constant 1 : index
    %6 = memref.load %arg6[%5, %c1] : memref<2x2xf32, #tpu.memory_space<smem>>
    %c0_1 = arith.constant 0 : index
    %c0_2 = arith.constant 0 : index
    %c0_3 = arith.constant 0 : index
    %c0_4 = arith.constant 0 : index
    %7 = vector.load %arg3[%c0_1, %c0_2, %c0_3, %c0_4] : memref<1x1x8x16xf32, #tpu.memory_space<vmem>>, vector<1x1x8x16xf32>
    %8 = vector.shape_cast %7 : vector<1x1x8x16xf32> to vector<8x16xf32>
    %c8_i32 = arith.constant 8 : i32
    %9 = arith.muli %arg1, %c8_i32 : i32
    %c8_i32_5 = arith.constant 8 : i32
    %10 = arith.muli %arg2, %c8_i32_5 : i32
    %11 = arith.addi %9, %10 : i32
    %12 = arith.sitofp %11 : i32 to f32
    %13 = tpu.iota {dimensions = array<i32: 0>} : vector<8x1xi32>
    %14 = arith.sitofp %13 : vector<8x1xi32> to vector<8x1xf32>
    %15 = vector.broadcast %12 : f32 to vector<8x1xf32>
    %16 = arith.addf %14, %15 : vector<8x1xf32>
    %17 = tpu.iota {dimensions = array<i32: 1>} : vector<1x16xi32>
    %18 = arith.sitofp %17 : vector<1x16xi32> to vector<1x16xf32>
    %19 = vector.broadcast %4 : f32 to vector<8x1xf32>
    %20 = arith.mulf %19, %16 : vector<8x1xf32>
    %21 = vector.broadcast %6 : f32 to vector<1x16xf32>
    %22 = arith.mulf %21, %18 : vector<1x16xf32>
    %23 = arith.mulf %8, %8 : vector<8x16xf32>
    %24 = arith.mulf %23, %23 : vector<8x16xf32>
    %cst = arith.constant 4.41941737E-8 : f32
    %25 = vector.broadcast %cst : f32 to vector<8x16xf32>
    %26 = arith.addf %24, %25 : vector<8x16xf32>
    %cst_6 = arith.constant 1.000000e+00 : f32
    %27 = vector.broadcast %cst_6 : f32 to vector<8x16xf32>
    %28 = arith.divf %27, %26 : vector<8x16xf32>
    %cst_7 = arith.constant 9.99999997E-7 : f32
    %29 = vector.broadcast %cst_7 : f32 to vector<8x16xf32>
    %30 = arith.mulf %29, %28 : vector<8x16xf32>
    %31 = tpu.iota {dimensions = array<i32: 1>} : vector<1x128xi32>
    %cst_8 = arith.constant 1.000000e+30 : f32
    %32 = vector.broadcast %cst_8 : f32 to vector<8x16xf32>
    %c0_9 = arith.constant 0 : index
    %c0_10 = arith.constant 0 : index
    %c0_11 = arith.constant 0 : index
    %c0_12 = arith.constant 0 : index
    %33 = vector.load %arg9[%c0_9, %c0_10, %c0_11, %c0_12] : memref<1x1x1x128xf32, #tpu.memory_space<vmem>>, vector<1x1x1x128xf32>
    %34 = vector.shape_cast %33 : vector<1x1x1x128xf32> to vector<1x128xf32>
    %c0_i32_13 = arith.constant 0 : i32
    %c8_i32_14 = arith.constant 8 : i32
    %35 = arith.addi %c0_i32_13, %c8_i32_14 : i32
    %c1_i32 = arith.constant 1 : i32
    %36:2 = scf.for %arg10 = %c0_i32_13 to %35 step %c1_i32 iter_args(%arg11 = %32, %arg12 = %34) -> (vector<8x16xf32>, vector<1x128xf32>)  : i32 {
      %57 = arith.index_cast %arg0 : i32 to index
      %58 = arith.index_cast %arg10 : i32 to index
      %59 = memref.load %arg4[%57, %58] : memref<2x8xf32, #tpu.memory_space<smem>>
      %60 = arith.index_cast %arg0 : i32 to index
      %61 = arith.index_cast %arg10 : i32 to index
      %62 = memref.load %arg5[%60, %61] : memref<2x8xf32, #tpu.memory_space<smem>>
      %63 = vector.broadcast %59 : f32 to vector<8x1xf32>
      %64 = arith.subf %20, %63 : vector<8x1xf32>
      %65 = vector.broadcast %62 : f32 to vector<1x16xf32>
      %66 = arith.subf %22, %65 : vector<1x16xf32>
      %67 = arith.mulf %64, %64 : vector<8x1xf32>
      %68 = arith.mulf %66, %66 : vector<1x16xf32>
      %69 = vector.broadcast %67 : vector<8x1xf32> to vector<8x16xf32>
      %70 = vector.broadcast %68 : vector<1x16xf32> to vector<8x16xf32>
      %71 = arith.addf %69, %70 : vector<8x16xf32>
      %72 = math.sqrt %71 : vector<8x16xf32>
      %73 = arith.minimumf %arg11, %72 : vector<8x16xf32>
      %74 = arith.mulf %72, %28 : vector<8x16xf32>
      %75 = arith.addf %74, %30 : vector<8x16xf32>
      %cst_38 = arith.constant dense<0x7F800000> : vector<16xf32>
      %76 = vector.multi_reduction <minimumf>, %75, %cst_38 [0] : vector<8x16xf32> to vector<16xf32>
      %77 = vector.shape_cast %76 : vector<16xf32> to vector<1x16xf32>
      %cst_39 = arith.constant dense<0x7F800000> : vector<1xf32>
      %78 = vector.multi_reduction <minimumf>, %77, %cst_39 [1] : vector<1x16xf32> to vector<1xf32>
      %79 = vector.shape_cast %78 : vector<1xf32> to vector<1x1xf32>
      %80 = vector.broadcast %arg10 : i32 to vector<1x128xi32>
      %81 = arith.cmpi eq, %31, %80 : vector<1x128xi32>
      %82 = vector.broadcast %79 : vector<1x1xf32> to vector<1x128xf32>
      %83 = arith.minimumf %arg12, %82 : vector<1x128xf32>
      %84 = arith.select %81, %83, %arg12 : vector<1x128xi1>, vector<1x128xf32>
      scf.yield %73, %84 : vector<8x16xf32>, vector<1x128xf32>
    }
    %c8_i32_15 = arith.constant 8 : i32
    %c0_16 = arith.constant 0 : index
    %c0_17 = arith.constant 0 : index
    %c0_18 = arith.constant 0 : index
    %c0_19 = arith.constant 0 : index
    %37 = vector.load %arg9[%c0_16, %c0_17, %c0_18, %c0_19] : memref<1x1x1x128xf32, #tpu.memory_space<vmem>>, vector<1x1x1x128xf32>
    %38 = vector.shape_cast %37 : vector<1x1x1x128xf32> to vector<1x128xf32>
    %39 = vector.shape_cast %36#1 : vector<1x128xf32> to vector<1x1x1x128xf32>
    tpu.vector_store %arg9[%c0_16, %c0_17, %c0_18, %c0_19], %39 {strides = array<i32>} : memref<1x1x1x128xf32, #tpu.memory_space<vmem>>, vector<1x1x1x128xf32>,
    %c0_20 = arith.constant 0 : index
    %c0_21 = arith.constant 0 : index
    %c0_22 = arith.constant 0 : index
    %c0_23 = arith.constant 0 : index
    %40 = vector.load %arg7[%c0_20, %c0_21, %c0_22, %c0_23] : memref<1x1x1x16xf32, #tpu.memory_space<vmem>>, vector<1x1x1x16xf32>
    %41 = vector.shape_cast %40 : vector<1x1x1x16xf32> to vector<1x16xf32>
    %42 = arith.mulf %8, %36#0 : vector<8x16xf32>
    %cst_24 = arith.constant dense<0.000000e+00> : vector<16xf32>
    %43 = vector.multi_reduction <add>, %42, %cst_24 [0] : vector<8x16xf32> to vector<16xf32>
    %44 = vector.shape_cast %43 : vector<16xf32> to vector<1x16xf32>
    %45 = arith.addf %41, %44 : vector<1x16xf32>
    %c0_25 = arith.constant 0 : index
    %c0_26 = arith.constant 0 : index
    %c0_27 = arith.constant 0 : index
    %c0_28 = arith.constant 0 : index
    %46 = vector.load %arg7[%c0_25, %c0_26, %c0_27, %c0_28] : memref<1x1x1x16xf32, #tpu.memory_space<vmem>>, vector<1x1x1x16xf32>
    %47 = vector.shape_cast %46 : vector<1x1x1x16xf32> to vector<1x16xf32>
    %48 = vector.shape_cast %45 : vector<1x16xf32> to vector<1x1x1x16xf32>
    tpu.vector_store %arg7[%c0_25, %c0_26, %c0_27, %c0_28], %48 {strides = array<i32>} : memref<1x1x1x16xf32, #tpu.memory_space<vmem>>, vector<1x1x1x16xf32>,
    %c0_29 = arith.constant 0 : index
    %c0_30 = arith.constant 0 : index
    %c0_31 = arith.constant 0 : index
    %c0_32 = arith.constant 0 : index
    %49 = vector.load %arg8[%c0_29, %c0_30, %c0_31, %c0_32] : memref<1x1x1x16xf32, #tpu.memory_space<vmem>>, vector<1x1x1x16xf32>
    %50 = vector.shape_cast %49 : vector<1x1x1x16xf32> to vector<1x16xf32>
    %cst_33 = arith.constant dense<0.000000e+00> : vector<16xf32>
    %51 = vector.multi_reduction <add>, %8, %cst_33 [0] : vector<8x16xf32> to vector<16xf32>
    %52 = vector.shape_cast %51 : vector<16xf32> to vector<1x16xf32>
    %53 = arith.addf %50, %52 : vector<1x16xf32>
    %c0_34 = arith.constant 0 : index
    %c0_35 = arith.constant 0 : index
    %c0_36 = arith.constant 0 : index
    %c0_37 = arith.constant 0 : index
    %54 = vector.load %arg8[%c0_34, %c0_35, %c0_36, %c0_37] : memref<1x1x1x16xf32, #tpu.memory_space<vmem>>, vector<1x1x1x16xf32>
    %55 = vector.shape_cast %54 : vector<1x1x1x16xf32> to vector<1x16xf32>
    %56 = vector.shape_cast %53 : vector<1x16xf32> to vector<1x1x1x16xf32>
    tpu.vector_store %arg8[%c0_34, %c0_35, %c0_36, %c0_37], %56 {strides = array<i32>} : memref<1x1x1x16xf32, #tpu.memory_space<vmem>>, vector<1x1x1x16xf32>,
    return
  }
  func.func @transform_0(%arg0: i32, %arg1: i32, %arg2: i32) -> (i32, i32, i32, i32) {
    %c0_i32 = arith.constant 0 : i32
    %c0_i32_0 = arith.constant 0 : i32
    return %arg0, %arg1, %arg2, %c0_i32 : i32, i32, i32, i32
  }
  func.func @transform_1(%arg0: i32, %arg1: i32, %arg2: i32) -> (i32, i32) {
    %c0_i32 = arith.constant 0 : i32
    %c0_i32_0 = arith.constant 0 : i32
    %c0_i32_1 = arith.constant 0 : i32
    return %c0_i32, %c0_i32_0 : i32, i32
  }
  func.func @transform_2(%arg0: i32, %arg1: i32, %arg2: i32) -> (i32, i32) {
    %c0_i32 = arith.constant 0 : i32
    %c0_i32_0 = arith.constant 0 : i32
    %c0_i32_1 = arith.constant 0 : i32
    return %c0_i32, %c0_i32_0 : i32, i32
  }
  func.func @transform_3(%arg0: i32, %arg1: i32, %arg2: i32) -> (i32, i32) {
    %c0_i32 = arith.constant 0 : i32
    %c0_i32_0 = arith.constant 0 : i32
    %c0_i32_1 = arith.constant 0 : i32
    return %c0_i32, %c0_i32_0 : i32, i32
  }
  func.func @transform_4(%arg0: i32, %arg1: i32, %arg2: i32) -> (i32, i32, i32, i32) {
    %c0_i32 = arith.constant 0 : i32
    %c0_i32_0 = arith.constant 0 : i32
    %c0_i32_1 = arith.constant 0 : i32
    return %arg0, %arg1, %c0_i32, %c0_i32_0 : i32, i32, i32, i32
  }
  func.func @transform_5(%arg0: i32, %arg1: i32, %arg2: i32) -> (i32, i32, i32, i32) {
    %c0_i32 = arith.constant 0 : i32
    %c0_i32_0 = arith.constant 0 : i32
    %c0_i32_1 = arith.constant 0 : i32
    return %arg0, %arg1, %c0_i32, %c0_i32_0 : i32, i32, i32, i32
  }
  func.func @transform_6(%arg0: i32, %arg1: i32, %arg2: i32) -> (i32, i32, i32, i32) {
    %c0_i32 = arith.constant 0 : i32
    %c0_i32_0 = arith.constant 0 : i32
    %c0_i32_1 = arith.constant 0 : i32
    return %arg0, %arg1, %c0_i32, %c0_i32_0 : i32, i32, i32, i32
  }
}

</mosaic_0001>

<bundles_post_ra>
// kernel: tpu_custom_call.1
= control target key start
LH: loop header
LB: loop body
LE: loop exit
PB: predicated region body
PF: predicated region fallthrough
CT: control target
= control target key end

     0   :  { %s1551_s0 = inlined_call_operand.hbm [shape: f32[2,2,8,16], index: 0, kind: input, shape index: {}]   ;;  %s1552_s1 = inlined_call_operand.vmem [shape: f32[2,8], index: 1, kind: input, shape index: {}]   ;;  %s1553_s2 = inlined_call_operand.vmem [shape: f32[2,8], index: 2, kind: input, shape index: {}]   ;;  %s1554_s3 = inlined_call_operand.vmem [shape: f32[2,2], index: 3, kind: input, shape index: {}]   ;;  %s1555_s4 = inlined_call_operand.hbm [shape: f32[2,2,1,16], index: 4, kind: output, shape index: {0}]   ;;  %s1556_s5 = inlined_call_operand.hbm [shape: f32[2,2,1,16], index: 5, kind: output, shape index: {1}]   ;;  %s1557_s6 = inlined_call_operand.hbm [shape: f32[2,2,1,128], index: 6, kind: output, shape index: {2}]  }
   0x1   :  { %1566 = sst [smem:[#allocation22_spill]] %s1552_s1 }
   0x2   :  { %1567 = sst [smem:[#allocation23_spill]] %s1553_s2 }
   0x3   :  { %1568 = sst [smem:[#allocation24_spill]] %s1554_s3 }
   0x4   :  { %1569 = sst [smem:[#allocation25_spill]] %s1555_s4 }
   0x5   :  { %12 = vsyncpa [#allocation3], 0 }
   0x6   :  { %14 = vsyncpa [#allocation3 + $0x1], 0 }
   0x7   :  { %15 = vsyncpa [#allocation5], 0 }
   0x8   :  { %16 = vsyncpa [#allocation8], 0 }
   0x9   :  { %17 = vsyncpa [#allocation4], 0 }
   0xa   :  { %19 = vsyncpa [#allocation4 + $0x1], 0 }
   0xb   :  { %20 = vsyncpa [#allocation12], 0 }
   0xc   :  { %22 = vsyncpa [#allocation12 + $0x1], 0  ;;  %s1185_s21 = smov 0   ;;  %s1187_s22 = smov 0  }
   0xd   :  { %s1189_s23 = smov 0   ;;  %s1191_s24 = smov 0  }
   0xe   :  { %s1193_s25 = smov 0   ;;  %s1195_s26 = smov 0  }
   0xf   :  { %s1197_s27 = smov 0   ;;  %s1199_s28 = smov 0  }
  0x10 LB: > { %1570 = sst [smem:[#allocation19_spill]] %s1099_s21  ;;  %s1226_s29 = sadd.s32 4294967295, %s1127_s28   ;;  %s1127_s28 = sphi %s1199_s28, %s28_s28   ;;  %s1123_s27 = sphi %s1197_s27, %s1602_s27   ;;  %s1119_s26 = sphi %s1195_s26, %s1601_s26   ;;  %s1115_s25 = sphi %s1193_s25, %s1600_s25   ;;  %s1111_s24 = sphi %s1191_s24, %s1599_s24   ;;  %s1107_s23 = sphi %s1189_s23, %s1598_s23   ;;  %s1103_s22 = sphi %s1187_s22, %s1597_s22   ;;  %s1099_s21 = sphi %s1185_s21, %s1596_s21  }
  0x11   : > { %s1561_s30 = sadd.s32 4294967294, %s1127_s28   ;;  %p71_p0 = scmp.ne.s32.totalorder %s1103_s22, %s1099_s21 }
  0x12   : > { %p1558_p1 = scmp.eq.s32.totalorder %s1226_s29, 0  ;;  %p166_p3 = scmp.eq.s32.totalorder %s1561_s30, 3 }
  0x13   : > { %p701_p5 = scmp.ge.s32.totalorder %s1127_s28, 1  ;;  %p229_p7 = scmp.lt.s32.totalorder %s1127_s28, 5 }
  0x14   : > { %p1237_p4 = por %p1558_p1, %p71_p0  ;;  %p1242_p6 = por %p166_p3, %p71_p0 }
  0x15   : > { %s1574_s2 = sld [smem:[#allocation23_spill]]  ;;  %p1250_p8 = pnand %p701_p5, %p229_p7 }
  0x16   : > { %s1571_s7 = scalar_select %p1237_p4, 1, 0 }
  0x17   : > { %s1572_s8 = scalar_select %p1242_p6, 1, 0 }
  0x18   : > { %s1575_s12 = scalar_select %p1250_p8, 1, 0 }
  0x19   : > { %1573 = sst [smem:[#allocation20_spill]] %s1572_s8  ;;  %p745_p9 = pneg %p1250_p8 }
  0x1a   : > { %s1577_s1 = sld [smem:[#allocation22_spill]] }
  0x1b   : > { %s253_s11 = sshll.u32 %s1574_s2, 4  ;;  %p1258_p10 = pnand %p745_p9, %p1558_p1  ;;  %s254_s11 = int_to_ptr.vmem [resolvable:$true] %s253_s11 }
  0x1c   : > { %s874_s17 = scalar_lea.vmem %s254_s11, 32  ;;  %p882_p3 = scmp.lt.s32.totalorder %s254_s11, %s254_s11 }
  0x1d   : > { %p875_p11 = scmp.ne.s32.totalorder %s254_s11, %s874_s17  ;;  %p876_p12 = pneg %p1258_p10 }
  0x1e   : > { %p883_p5 = scmp.lt.s32.totalorder %s874_s17, %s874_s17 }
  0x1f   : > { %p877_p13 = pnand %p876_p12, %p875_p11 }
  0x20   : > { %s242_s16 = sshll.u32 %s1577_s1, 4  ;;  %p884_p7 = por %p883_p5, %p882_p3  ;;  %s243_s16 = int_to_ptr.vmem [resolvable:$true] %s242_s16 }
  0x21   : > { %p878_p0 = pneg %p877_p13 }
  0x23   : > { %p885_p9 = pnand %p884_p7, %p878_p0 }
  0x25   : > { %888 = shalt.err (!%p885_p9)
}
  0x26   : > { %s1141_s18 = smov [#allocation7]   ;;  %s889_s19 = scalar_lea.vmem %s243_s16, 32 }
  0x27   : > { %751 = dma.vmem_to_smem (!%p1258_p10), %s254_s11, 32, %s1141_s18, [#allocation8]  }
  0x28   : > { %p890_p1 = scmp.ne.s32.totalorder %s243_s16, %s889_s19  ;;  %p897_p4 = scmp.lt.s32.totalorder %s243_s16, %s243_s16 }
  0x29   : > { %p898_p8 = scmp.lt.s32.totalorder %s889_s19, %s889_s19 }
  0x2a   : > { %p892_p2 = pnand %p890_p1, %p876_p12 }
  0x2b   : > { %p899_p11 = por %p898_p8, %p897_p4 }
  0x2c   : > { %p893_p6 = pneg %p892_p2 }
  0x2e   : > { %p900_p13 = pnand %p899_p11, %p893_p6 }
  0x30   : > { %903 = shalt.err (!%p900_p13)
}
  0x31   : > { %s1142_s20 = smov [#allocation6]   ;;  %s1578_s3 = sld [smem:[#allocation24_spill]] }
  0x32   : > { %748 = dma.vmem_to_smem (!%p1258_p10), %s243_s16, 32, %s1142_s20, [#allocation5]  }
  0x37   : > { %s264_s11 = sshll.u32 %s1578_s3, 4  ;;  %s265_s11 = int_to_ptr.vmem [resolvable:$true] %s264_s11 }
  0x38   : > { %s904_s14 = scalar_lea.vmem %s265_s11, 32  ;;  %p912_p3 = scmp.lt.s32.totalorder %s265_s11, %s265_s11 }
  0x39   : > { %p905_p0 = scmp.ne.s32.totalorder %s265_s11, %s904_s14  ;;  %p913_p4 = scmp.lt.s32.totalorder %s904_s14, %s904_s14 }
  0x3b   : > { %p907_p1 = pnand %p905_p0, %p876_p12  ;;  %p914_p6 = por %p913_p4, %p912_p3 }
  0x3d   : > { %p908_p2 = pneg %p907_p1 }
  0x3f   : > { %p915_p8 = pnand %p914_p6, %p908_p2 }
  0x41   : > { %918 = shalt.err (!%p915_p8)
}
  0x42   : > { %s1143_s15 = smov [#allocation9]   ;;  %s43_s16 = sadd.s32 1, %s1119_s26 }
  0x43   : > { %754 = dma.vmem_to_smem (!%p1258_p10), %s265_s11, 32, %s1143_s15, [#allocation8]  }
  0x44   : > { %p45_p12 = scmp.ge.s32.totalorder %s43_s16, 2  ;;  %s47_s17 = sadd.s32 1, %s1123_s27 }
  0x45   : > { %s58_s18 = sadd.s32 1, %s1107_s23  ;;  %p65_p5 = scmp.ne.s32.totalorder %s1107_s23, %s1103_s22 }
  0x46   : > { %s1604_s16 = smov (%p45_p12, %s43_s16), 0  ;;  %s1606_s17 = smov (!%p45_p12, %s47_s17), %s1123_s27 }
  0x47   : > { %1579 = sst [smem:[#allocation21_spill]] %s1604_s16  ;;  %s52_s13 = ssub.s32 %s1119_s26, %s1604_s16 }
  0x48   : > { %p66_p7 = scmp.eq.s32.totalorder %s1127_s28, 0  ;;  %p49_p9 = scmp.ge.s32.totalorder %s1606_s17, 2 }
  0x49   : > { %p1580_p11 = scmp.eq.s32.totalorder %s1226_s29, 3  ;;  %p772_p0 = scmp.lt.s32.totalorder %s1127_s28, 4 }
  0x4a   : > { %p1302_p10 = por %p66_p7, %p65_p5  ;;  %s1608_s17 = smov (%p49_p9, %s1606_s17), 0 }
  0x4b   : > { %p1298_p13 = por %p1580_p11, %p65_p5  ;;  %s275_s9 = sand.u32 1, %s1107_s23  }
  0x4c   : > { %s707_s10 = sshll.u32 %s1123_s27, 1  ;;  %s51_s11 = ssub.s32 %s1123_s27, %s1608_s17 }
  0x4d   : > { %s53_s14 = sor.u32 %s52_s13, %s51_s11  ;;  %s706_s15 = sshll.u32 %s275_s9, 3 }
  0x4e   : > { %p56_p1 = scmp.eq.s32.totalorder %s53_s14, 0  ;;  %s285_s30 = sadd.s32 %s1119_s26, %s707_s10 }
  0x4f   : > { %s279_s1 = scalar_lea.vmem [#allocation2], %s706_s15  ;;  %s708_s16 = sshll.u32 %s285_s30, 7 }
  0x50   : > { %s289_s2 = sshll.u32 %s279_s1, 4  ;;  %s1322_s4 = scalar_lea.hbm %s1551_s0, %s708_s16  ;;  %s1317_s2 = int_to_ptr.vmem [resolvable:$true] %s289_s2 }
  0x51   : > { %s1315_s3 = scalar_select %p56_p1, %s1107_s23, %s58_s18  }
  0x52   : > { %p1328_p2 = pnand %p772_p0, %p1302_p10  ;;  %s276_s1 = scalar_lea.sflag [#allocation3], %s275_s9 }
  0x53   : > { %s919_s30 = scalar_lea.hbm %s1322_s4, 128  ;;  %s924_s16 = scalar_lea.hbm %s1551_s0, 512 }
  0x54   : > { %p920_p3 = scmp.ne.s32.totalorder %s1322_s4, %s919_s30  ;;  %p921_p4 = pneg %p1328_p2 }
  0x55   : > { %p925_p12 = scmp.lt.u32.totalorder %s1322_s4, %s1551_s0  ;;  %p926_p5 = scmp.lt.u32.totalorder %s924_s16, %s919_s30 }
  0x56   : > { %p922_p6 = pnand %p921_p4, %p920_p3  ;;  %p928_p9 = scmp.lt.u32.totalorder %s919_s30, %s1322_s4 }
  0x57   : > { %p927_p7 = por %p926_p5, %p925_p12 }
  0x58   : > { %p923_p8 = pneg %p922_p6 }
  0x59   : > { %p929_p11 = por %p928_p9, %p927_p7 }
  0x5b   : > { %p930_p10 = pnand %p929_p11, %p923_p8 }
  0x5d   : > { %933 = shalt.err (!%p930_p10)
}
  0x5e   : > { %s934_s9 = scalar_lea.vmem %s1317_s2, 128  ;;  %s1144_s10 = smov [#allocation2]  }
  0x5f   : > { %p935_p0 = scmp.ne.s32.totalorder %s1317_s2, %s934_s9  ;;  %s939_s11 = sshll.u32 %s1144_s10, 4  ;;  %s940_s11 = int_to_ptr.vmem [resolvable:$false] %s939_s11 }
  0x60   : > { %s941_s14 = scalar_lea.vmem %s940_s11, 256  ;;  %p942_p6 = scmp.lt.s32.totalorder %s1317_s2, %s940_s11 }
  0x61   : > { %p937_p1 = pnand %p935_p0, %p921_p4  ;;  %p943_p12 = scmp.lt.s32.totalorder %s941_s14, %s934_s9 }
  0x63   : > { %p938_p3 = pneg %p937_p1  ;;  %p944_p5 = por %p943_p12, %p942_p6 }
  0x65   : > { %p945_p7 = pnand %p944_p5, %p938_p3 }
  0x67   : > { %948 = shalt.err (!%p945_p7)
}
  0x68   : > { %758 = dma.hbm_to_vmem [thread:$0]  (!%p1328_p2), %s1322_s4, 128, %s1317_s2, %s276_s1  }
  0x69   : > { %p1584_p8 = scmp.ne.s32.totalorder %s1575_s12, 0 }
  0x6a   : > { %s1360_s15 = sand.u32 (!%p1584_p8), 1, %s1103_s22   ;;  %p1585_p4 = scmp.ne.s32.totalorder (!%p1584_p8), %s1571_s7, 0 }
  0x6b   : > { %298 = sbr.rel (%p1584_p8) target bundleno = 399 (0x18f), region = 36  ;;  %s710_s30 = sshll.u32 (!%p1584_p8), %s1360_s15, 3 }
  0x6c   : > { %s301_s21 = scalar_lea.sflag (!%p1584_p8), [#allocation3], %s1360_s15  ;;  %s304_s8 = scalar_lea.vmem (!%p1584_p8), [#allocation2], %s710_s30 }
  0x72   : > { %1078 = dma.done.wait (%p1585_p4), %s301_s21, 128  }
  0x73   : > { %1080 = vsyncadd (%p1585_p4), %s301_s21, 4294967168  ;;  %p1586_p9 = scmp.eq.s32.totalorder %s1226_s29, 0 }
  0x75   : > { %1082 = dma.done.wait (%p1586_p9), [#allocation5], 32   ;;  %p1587_p2 = pmov %p1586_p9 }
  0x77   : > { %1084 = vsyncadd (%p1587_p2), [#allocation5], 4294967264  ;;  %p1588_p11 = pmov %p1587_p2 }
  0x78   : > { %p1589_p10 = pmov %p1587_p2 }
  0x79   : > { %1086 = dma.done.wait (%p1588_p11), [#allocation8], 64  }
  0x7a   : > { %1088 = vsyncadd (%p1589_p10), [#allocation8], 4294967232 }
  0x7b   : > { %321 = sfence }
  0x7c   : > { %vm357_vm0 = vcmask 122880   ;;  %v370_v0 = vlaneseq  ;;  %s1377_s2 = scalar_lea.vmem [#allocation13], %s1360_s15  ;;  %v1145_v1 = vmov 1e+30   ;;  %s1381_s4 = scalar_lea.vmem [#allocation10], %s1360_s15  ;;  %v1146_v2 = vmov 0.0  }
  0x7d   : > { %360 = vst [vmem:[%s1377_s2] sm:$0x1] %v1145_v1  ;;  %358 = vst.msk [vmem:[%s1381_s4] sm:$0x1] %vm357_vm0, %v1146_v2  ;;  %s714_s7 = sshll.u32 %s1115_s25, 7  ;;  %v1386_v3 = vld [vmem:[%s304_s8] sm:$0xff]  ;;  %s1389_s12 = scalar_lea.vmem [#allocation11], %s1360_s15 }
  0x7e   : > { %359 = vst.msk [vmem:[%s1389_s12] sm:$0x1] %vm357_vm0, %v1146_v2  ;;  %s362_s13 = sld [smem:[#allocation9 + %s714_s7]]  ;;  %s363_s1 = sadd.s32 1, %s714_s7  ;;  %v371_v4 = vshrl.u32 %v370_v0, 7  ;;  %v1393_v5 = vand.u32 127, %v370_v0  ;;  %v382_v6 = vmul.f32 %v1386_v3, %v1386_v3 }
  0x7f   : > { %s364_s16 = sld [smem:[#allocation9 + %s363_s1]]  ;;  %s715_s18 = sshll.u32 %s1111_s24, 3  ;;  %v1133_v21 = vmov 1e+30  }
  0x80   : > { %s369_s20 = scvt.s32.f32 %s715_s18  ;;  %v372_v7 = vcvt.s32.f32 %v371_v4  ;;  %v383_v8 = vmul.f32 %v382_v6, %v382_v6  ;;  %v377_v10 = vcvt.s32.f32 %v1393_v5  ;;  %s1400_s9 = smov 0  }
  0x82   : > { %v373_v9 = vstv %s369_s20  ;;  %v384_v11 = vadd.f32 4.4194174e-08, %v383_v8 }
  0x83   : > { %v374_v12 = vadd.f32 %v373_v9, %v372_v7 }
  0x84   : > { %v388_v13 = vld [vmem:[%s1377_s2] sm:$0x1]   ;;  %v378_v14 = vstv %s362_s13  ;;  %870 = vrcp.f32 %v384_v11 }
  0x85   : > { %v379_v15 = vmul.f32 %v378_v14, %v374_v12  ;;  %v380_v16 = vstv %s364_s16  ;;  %v1129_v20 = vmov %v388_v13  }
  0x86   : > { %v381_v17 = vmul.f32 %v380_v16, %v377_v10 }
  0x8e   : > { %v871_v18 = vpop.eup %870 }
  0x8f   : > { %v387_v19 = vmul.f32 1e-06, %v871_v18 }
  0x90 LB: >> { %s397_s10 = sshra.s32 %s1139_s9, 7  ;;  %s402_s11 = sand.u32 127, %s1139_s9  ;;  %vm423_vm3 = vcmask 130048   ;;  %v434_v45 = vstv %s1139_s9  ;;  %s1139_s9 = sphi %s1400_s9, %s394_s9   ;;  %v1135_v21 = vphi %v1133_v21, %v1134_v21   ;;  %v1131_v20 = vphi %v1129_v20, %v1130_v20  }
  0x91   : >> { %s399_s14 = sadd.s32 %s1115_s25, %s397_s10  ;;  %vm435_vm4 = vcmp.eq.s32.totalorder %v1393_v5, %v434_v45  ;;  %s394_s9 = sadd.s32 1, %s1139_s9  }
  0x92   : >> { %s716_s30 = sshll.u32 %s399_s14, 7  ;;  %p391_p0 = scmp.ge.s32.totalorder %s394_s9, 8  }
  0x93   : >> { %s403_s21 = sadd.s32 %s716_s30, %s402_s11  ;;  %v453_v49 = vsel (%p391_p0), %vm423_vm3, %v1386_v3, 0.0  ;;  %s717_s13 = sshll.u32 (%p391_p0), %s1115_s25, 1  ;;  %v452_v61 = vld [vmem:[%s1389_s12] sm:$0x1] (%p391_p0) }
  0x94   : >> { %s404_s8 = sld [smem:[#allocation6 + %s403_s21]]  ;;  %v454_v51 = vrot.slane (%p391_p0), %v453_v49, 4  ;;  %s481_s1 = sadd.s32 (%p391_p0), %s1111_s24, %s717_s13  ;;  %v439_v0 = vld [vmem:[%s1381_s4] sm:$0x1] (%p391_p0) }
  0x95   : >> { %s405_s7 = sld [smem:[#allocation7 + %s403_s21]]  ;;  %s466_s16 = sand.u32 (%p391_p0), 1, %s1226_s29  }
  0x96   : > { %v455_v53 = vadd.f32 (%p391_p0), %v454_v51, %v453_v49  ;;  %s500_s18 = sshll.u32 (%p391_p0), %s1389_s12, 4  ;;  %s718_s20 = sshll.u32 (%p391_p0), %s481_s1, 4  ;;  %s1427_s18 = int_to_ptr.vmem [resolvable:$true] %s500_s18 }
  0x97   : > { %s515_s9 = sshll.u32 (%p391_p0), %s1377_s2, 4  ;;  %s485_s25 = sshll.u32 (%p391_p0), %s1381_s4, 4  ;;  %s1440_s9 = int_to_ptr.vmem [resolvable:$true] %s515_s9  ;;  %s1449_s25 = int_to_ptr.vmem [resolvable:$true] %s485_s25 }
  0x98   : > { %v456_v55 = vrot.slane (%p391_p0), %v455_v53, 2  ;;  %s1433_s10 = scalar_lea.hbm (%p391_p0), %s1556_s5, %s718_s20  ;;  %s1438_s30 = scalar_lea.hbm (%p391_p0), %s1557_s6, %s718_s20 }
  0x99   : > { %s1451_s13 = scalar_lea.sflag (%p391_p0), [#allocation12], %s466_s16  ;;  %s949_s1 = scalar_lea.vmem (%p391_p0), %s1427_s18, 16 }
  0x9a   : >> { %v406_v22 = vstv %s404_s8  ;;  %v457_v57 = vadd.f32 (%p391_p0), %v456_v55, %v455_v53  ;;  %s1590_s8 = sld [smem:[#allocation25_spill]] (%p391_p0)  ;;  %p950_p1 = scmp.ne.s32.totalorder (%p391_p0), %s1427_s18, %s949_s1 }
  0x9b   : >> { %v408_v23 = vstv %s405_s7  ;;  %v407_v24 = vsub.f32 %v379_v15, %v406_v22  ;;  %s1147_s24 = smov (%p391_p0), [#allocation11]  }
  0x9c   : >> { %v409_v25 = vsub.f32 %v381_v17, %v408_v23  ;;  %v458_v59 = vrot.slane (%p391_p0), %v457_v57, 1  ;;  %p951_p3 = pnand (%p391_p0), %p950_p1, %p1298_p13  ;;  %s953_s29 = sshll.u32 (%p391_p0), %s1147_s24, 4  ;;  %s954_s29 = int_to_ptr.vmem [resolvable:$false] %s953_s29 }
  0x9d   : >> { %v410_v26 = vmul.f32 %v407_v24, %v407_v24  ;;  %s955_s11 = scalar_lea.vmem (%p391_p0), %s954_s29, 32  ;;  %p956_p12 = scmp.lt.s32.totalorder (%p391_p0), %s1427_s18, %s954_s29 }
  0x9e   : >> { %v411_v27 = vmul.f32 %v409_v25, %v409_v25  ;;  %v459_v62 = vadd.f32 (%p391_p0), %v458_v59, %v457_v57  ;;  %p952_p6 = pneg (%p391_p0), %p951_p3  ;;  %p957_p5 = scmp.lt.s32.totalorder (%p391_p0), %s955_s11, %s949_s1 }
  0xa0   : >> { %v412_v28 = vadd.f32 %v411_v27, %v410_v26  ;;  %v460_v1 = vadd.f32 (%p391_p0), %v459_v62, %v452_v61  ;;  %s1447_s7 = scalar_lea.hbm (%p391_p0), %s1590_s8, %s718_s20  ;;  %p958_p7 = por (%p391_p0), %p957_p5, %p956_p12 }
  0xa2   : >> { %872 = vrsqrt.f32 %v412_v28  ;;  %vm415_vm1 = vcmp.eq.f32.partialorder %v412_v28, inf  ;;  %v418_v30 = vand.u32 2147483648, %v412_v28  ;;  %vm417_vm2 = vcmp.eq.f32.partialorder %v412_v28, 0.0  ;;  %461 = vst.msk [vmem:[%s1389_s12] sm:$0x1] (%p391_p0), %vm357_vm0, %v460_v1  ;;  %p959_p8 = pnand (%p391_p0), %p958_p7, %p952_p6 }
  0xac   : >> { %v873_v29 = vpop.eup %872 }
  0xad   : >> { %v414_v31 = vmul.f32 %v873_v29, %v412_v28 }
  0xaf   : >> { %v416_v32 = vsel %vm415_vm1, %v412_v28, %v414_v31 }
  0xb0   : >> { %v419_v33 = vsel %vm417_vm2, %v418_v30, %v416_v32 }
  0xb1   : >> { %v420_v34 = vmin.f32 %v1135_v21, %v419_v33   ;;  %v421_v35 = vmul.f32 %v871_v18, %v419_v33 }
  0xb3   : >> { %v422_v36 = vadd.f32 %v421_v35, %v387_v19  ;;  %v1134_v21 = vmov %v420_v34   ;;  %v440_v50 = vmul.f32 (%p391_p0), %v420_v34, %v1386_v3 }
  0xb5   : >> { %v424_v37 = vsel %vm423_vm3, %v422_v36, inf  ;;  %v442_v52 = vsel (%p391_p0), %vm423_vm3, %v440_v50, 0.0 }
  0xb6   : >> { %v425_v38 = vrot.slane %v424_v37, 4  ;;  %v443_v54 = vrot.slane (%p391_p0), %v442_v52, 4 }
  0xb8   : >> { %v426_v39 = vmin.f32 %v424_v37, %v425_v38  ;;  %v444_v56 = vadd.f32 (%p391_p0), %v443_v54, %v442_v52 }
  0xba   : >> { %v427_v40 = vrot.slane %v426_v39, 2  ;;  %v445_v58 = vrot.slane (%p391_p0), %v444_v56, 2 }
  0xbc   : >> { %v428_v41 = vmin.f32 %v426_v39, %v427_v40  ;;  %v446_v60 = vadd.f32 (%p391_p0), %v445_v58, %v444_v56 }
  0xbe   : >> { %v429_v42 = vrot.slane %v428_v41, 1  ;;  %v447_v63 = vrot.slane (%p391_p0), %v446_v60, 1 }
  0xc0   : >> { %v430_v43 = vmin.f32 %v428_v41, %v429_v42  ;;  %v448_v2 = vadd.f32 (%p391_p0), %v447_v63, %v446_v60 }
  0xc2   : >> { %v431_v44 = vsel %vm423_vm3, %v430_v43, inf  ;;  %v449_v3 = vadd.f32 (%p391_p0), %v448_v2, %v439_v0 }
  0xc3   : >> { %432 = vmin.xlane.f32.xlu0 %v431_v44 }
 0x14e   : > { %393 = sbr.rel (!%p391_p0) target bundleno = 144 (0x90), region = 137 }
 0x150   : >> { %v433_v46 = vpop.xlane.xlu0 %432 }
 0x151   : >> { %v436_v47 = vmin.f32 %v1131_v20, %v433_v46 }
 0x153   : >> { %v437_v48 = vsel %vm435_vm4, %v436_v47, %v1131_v20  }
 0x154   : >> { %v1130_v20 = vmov %v437_v48   ;;  %438 = vst [vmem:[%s1377_s2] sm:$0x1] (%p391_p0), %v437_v48 }
 0x155   : > { %962 = shalt.err (!%p959_p8)
}
 0x156   : > { %s963_s12 = scalar_lea.hbm %s1433_s10, 16  ;;  %s967_s14 = scalar_lea.hbm %s1556_s5, 64 }
 0x157   : > { %p964_p4 = scmp.ne.s32.totalorder %s1433_s10, %s963_s12  ;;  %p968_p11 = scmp.lt.u32.totalorder %s1433_s10, %s1556_s5 }
 0x158   : > { %p969_p10 = scmp.lt.u32.totalorder %s967_s14, %s963_s12  ;;  %p971_p1 = scmp.lt.u32.totalorder %s963_s12, %s1433_s10 }
 0x159   : > { %p965_p9 = pnand %p964_p4, %p1298_p13 }
 0x15a   : > { %p970_p0 = por %p969_p10, %p968_p11 }
 0x15b   : > { %p966_p2 = pneg %p965_p9 }
 0x15c   : > { %p972_p3 = por %p971_p1, %p970_p0 }
 0x15e   : > { %p973_p6 = pnand %p972_p3, %p966_p2 }
 0x160   : > { %976 = shalt.err (!%p973_p6)
}
 0x161   : > { %740 = dma.vmem_to_hbm [thread:$0]  (%p1298_p13), %s1427_s18, 16, %s1433_s10, %s1451_s13   ;;  %451 = vst.msk [vmem:[%s1381_s4] sm:$0x1] %vm357_vm0, %v449_v3 }
 0x162   : > { %s977_s1 = scalar_lea.vmem %s1440_s9, 16  ;;  %s1148_s24 = smov [#allocation13]  }
 0x163   : > { %p978_p12 = scmp.ne.s32.totalorder %s1440_s9, %s977_s1  ;;  %s981_s29 = sshll.u32 %s1148_s24, 4  ;;  %s982_s29 = int_to_ptr.vmem [resolvable:$false] %s981_s29 }
 0x164   : > { %s983_s11 = scalar_lea.vmem %s982_s29, 32  ;;  %p984_p8 = scmp.lt.s32.totalorder %s1440_s9, %s982_s29 }
 0x165   : > { %p979_p5 = pnand %p978_p12, %p1298_p13  ;;  %p985_p4 = scmp.lt.s32.totalorder %s983_s11, %s977_s1 }
 0x167   : > { %p980_p7 = pneg %p979_p5  ;;  %p986_p9 = por %p985_p4, %p984_p8 }
 0x169   : > { %p987_p2 = pnand %p986_p9, %p980_p7 }
 0x16b   : > { %990 = shalt.err (!%p987_p2)
}
 0x16c   : > { %s991_s4 = scalar_lea.hbm %s1438_s30, 16  ;;  %s995_s12 = scalar_lea.hbm %s1557_s6, 64 }
 0x16d   : > { %p992_p11 = scmp.ne.s32.totalorder %s1438_s30, %s991_s4  ;;  %p996_p1 = scmp.lt.u32.totalorder %s1438_s30, %s1557_s6 }
 0x16e   : > { %p997_p3 = scmp.lt.u32.totalorder %s995_s12, %s991_s4  ;;  %p999_p12 = scmp.lt.u32.totalorder %s991_s4, %s1438_s30 }
 0x16f   : > { %p993_p10 = pnand %p992_p11, %p1298_p13 }
 0x170   : > { %p998_p6 = por %p997_p3, %p996_p1 }
 0x171   : > { %p994_p0 = pneg %p993_p10 }
 0x172   : > { %p1000_p5 = por %p999_p12, %p998_p6 }
 0x174   : > { %p1001_p7 = pnand %p1000_p5, %p994_p0 }
 0x176   : > { %1004 = shalt.err (!%p1001_p7)
}
 0x177   : > { %741 = dma.vmem_to_hbm [thread:$0]  (%p1298_p13), %s1440_s9, 16, %s1438_s30, %s1451_s13  }
 0x178   : > { %s463_s14 = scalar_lea.sflag [#allocation4], %s1360_s15  ;;  %s1005_s2 = scalar_lea.vmem %s1449_s25, 16 }
 0x179   : > { %p1006_p8 = scmp.ne.s32.totalorder %s1449_s25, %s1005_s2  ;;  %s1149_s21 = smov [#allocation10]  }
 0x17a   : > { %s1009_s1 = sshll.u32 %s1149_s21, 4  ;;  %s1010_s1 = int_to_ptr.vmem [resolvable:$false] %s1009_s1 }
 0x17b   : > { %p1007_p4 = pnand %p1006_p8, %p1298_p13  ;;  %s1011_s24 = scalar_lea.vmem %s1010_s1, 32 }
 0x17c   : > { %p1012_p2 = scmp.lt.s32.totalorder %s1449_s25, %s1010_s1  ;;  %p1013_p11 = scmp.lt.s32.totalorder %s1011_s24, %s1005_s2 }
 0x17d   : > { %p1008_p9 = pneg %p1007_p4 }
 0x17e   : > { %p1014_p10 = por %p1013_p11, %p1012_p2 }
 0x180   : > { %p1015_p0 = pnand %p1014_p10, %p1008_p9 }
 0x182   : > { %1018 = shalt.err (!%p1015_p0)
}
 0x183   : > { %s1019_s15 = scalar_lea.hbm %s1447_s7, 16  ;;  %s1023_s13 = scalar_lea.hbm %s1590_s8, 64 }
 0x184   : > { %p1020_p1 = scmp.ne.s32.totalorder %s1447_s7, %s1019_s15  ;;  %p1024_p12 = scmp.lt.u32.totalorder %s1447_s7, %s1590_s8 }
 0x185   : > { %p1025_p5 = scmp.lt.u32.totalorder %s1023_s13, %s1019_s15  ;;  %p1027_p8 = scmp.lt.u32.totalorder %s1019_s15, %s1447_s7 }
 0x186   : > { %p1021_p3 = pnand %p1020_p1, %p1298_p13 }
 0x187   : > { %p1026_p7 = por %p1025_p5, %p1024_p12 }
 0x188   : > { %p1022_p6 = pneg %p1021_p3 }
 0x189   : > { %p1028_p4 = por %p1027_p8, %p1026_p7 }
 0x18b   : > { %p1029_p9 = pnand %p1028_p4, %p1022_p6 }
 0x18d   : > { %1032 = shalt.err (!%p1029_p9)
}
 0x18e   : > { %739 = dma.vmem_to_hbm [thread:$0]  (%p1298_p13), %s1449_s25, 16, %s1447_s7, %s463_s14  }
 0x18f PF: > { %s1591_s4 = sld [smem:[#allocation19_spill]]  ;;  %s1592_s18 = sld [smem:[#allocation20_spill]] }
 0x190   : > { %p776_p2 = scmp.ge.s32.totalorder %s1127_s28, 2 }
 0x195   : > { %s527_s10 = sand.u32 1, %s1591_s4   ;;  %p1593_p11 = scmp.ne.s32.totalorder %s1592_s18, 0 }
 0x196   : > { %s528_s12 = scalar_lea.sflag [#allocation4], %s527_s10 }
 0x197   : > { %p760_p10 = pnand %p776_p2, %p1593_p11 }
 0x199   : > { %1090 = dma.done.wait (!%p760_p10), %s528_s12, 16  }
 0x19a   : > { %1092 = vsyncadd (!%p760_p10), %s528_s12, 4294967280  ;;  %s1594_s16 = sadd.s32 4294967294, %s1127_s28  }
 0x19b   : > { %s535_s20 = sand.u32 1, %s1594_s16  }
 0x19c   : > { %s536_s2 = scalar_lea.sflag [#allocation12], %s535_s20 }
 0x19d   : > { %1094 = dma.done.wait (!%p760_p10), %s536_s2, 32  }
 0x19e   : > { %1096 = vsyncadd (!%p760_p10), %s536_s2, 4294967264  ;;  %s28_s28 = sadd.s32 1, %s1127_s28   ;;  %s1595_s19 = sld [smem:[#allocation21_spill]] }
 0x19f   : > { %p25_p13 = scmp.ge.s32.totalorder %s28_s28, 6   ;;  %s1596_s21 = smov %s1103_s22 }
 0x1a0   : > { %s1597_s22 = smov %s1107_s23  ;;  %s1598_s23 = smov %s1315_s3 }
 0x1a1   : > { %s1599_s24 = smov %s1119_s26  ;;  %s1600_s25 = smov %s1123_s27 }
 0x1a2   : > { %s1602_s27 = smov %s1608_s17  ;;  %27 = sbr.rel (!%p25_p13) target bundleno = 16 (0x10), region = 148 }
 0x1a4   : > { %s1601_s26 = smov %s1595_s19 }
 0x1a9   :  { %548 = vsyncpa [#allocation3], 1 }
 0x1aa   :  { %550 = vsyncpa [#allocation3 + $0x1], 1 }
 0x1ab   :  { %551 = vsyncpa [#allocation4], 1 }
 0x1ac   :  { %553 = vsyncpa [#allocation4 + $0x1], 1 }
 0x1ad   :  { %554 = vsyncpa [#allocation12], 1 }
 0x1ae   :  { %556 = vsyncpa [#allocation12 + $0x1], 1 }
 0x1af   :  { %557 = vsyncpa [#allocation5], 1 }
 0x1b0   :  { %559 = vsyncpa [#allocation5 + $0x1], 1 }
 0x1b1   :  { %560 = vsyncpa [#allocation8], 1 }

</bundles_post_ra>
